<compile_context>
chip_gen: v7x
topology: tpu7x:2x2x1
jax: 0.10.0
libtpu: 0.0.40
codegen_flags: <defaults>
</compile_context>

<pallas_src>
import functools

import numpy as np
import jax
import jax.numpy as jnp
from jax.experimental import pallas as pl
from jax.experimental.pallas import tpu as pltpu

# small, TPU-friendly stand-ins for the 512/1024 sizes of the real module
DOWN = 16          # stands in for 512
UP = 32            # stands in for 1024
N_CLASSES = 9      # len(all_masks)
HIDDEN = 32
KP = 32            # im2col contraction (3*3*3 = 27) padded to 32 for clean vreg packing


# ----------------------------------------------------------------------------
# Pallas kernels
# ----------------------------------------------------------------------------
def _resize_kernel(x_ref, mh_ref, mwt_ref, o_ref):
    """One (B*C) image per grid step: out = Mh @ X @ Mw^T (two MXU matmuls, all in VMEM)."""
    t = jnp.dot(mh_ref[...], x_ref[0], preferred_element_type=jnp.float32)      # (Hout, W)
    o = jnp.dot(t.astype(jnp.bfloat16), mwt_ref[...],
                preferred_element_type=jnp.float32)                              # (Hout, Wout)
    o_ref[0] = o.astype(o_ref.dtype)


def resize_fused(x, Mh, Mw, out_dtype=jnp.float32):
    """Fused separable resize: x:[B,C,H,W] -> [B,C,Hout,Wout] in a single pallas_call."""
    B, C, H, W = x.shape
    Hout, Wout = Mh.shape[0], Mw.shape[0]
    xb = x.reshape(B * C, H, W).astype(jnp.bfloat16)
    out = pl.pallas_call(
        _resize_kernel,
        out_shape=jax.ShapeDtypeStruct((B * C, Hout, Wout), out_dtype),
        grid=(B * C,),
        in_specs=[
            pl.BlockSpec((1, H, W), lambda i: (i, 0, 0)),
            pl.BlockSpec((Hout, H), lambda i: (0, 0)),
            pl.BlockSpec((W, Wout), lambda i: (0, 0)),
        ],
        out_specs=pl.BlockSpec((1, Hout, Wout), lambda i: (i, 0, 0)),
        compiler_params=pltpu.CompilerParams(dimension_semantics=("parallel",)),
    )(xb, Mh.astype(jnp.bfloat16), Mw.T.astype(jnp.bfloat16))
    return out.reshape(B, C, Hout, Wout)


def _seg_head_kernel(p_ref, w1_ref, b1_ref, w2_ref, b2_ref, o_ref, *, idxs, do_sum):
    """Fused (folded-affine) 3x3 conv + ReLU + 1x1 conv + softmax + channel select/sum.

    Channels are rows (sublanes), spatial positions are lanes, so every store is
    lane-dense and the 9-class logits/probabilities stay in vregs.
      p_ref : (1, KP, ts)          bf16 im2col patches (K padded 27->32)
      w1_ref: (HIDDEN, KP)         bf16 folded 3x3 conv weights
      b1_ref: (HIDDEN, 1)          f32  folded bias
      w2_ref: (N_CLASSES, HIDDEN)  bf16 1x1 conv weights
      b2_ref: (N_CLASSES, 1)       f32  bias
      o_ref : (1, n_out, ts)       f32  selected / summed probabilities
    """
    p = p_ref[0]                                                                 # (KP, ts)
    h = jnp.dot(w1_ref[...], p, preferred_element_type=jnp.float32) + b1_ref[...]
    h = jnp.maximum(h, 0.0)
    logits = jnp.dot(w2_ref[...], h.astype(jnp.bfloat16),
                     preferred_element_type=jnp.float32) + b2_ref[...]           # (NC, ts)
    m = jnp.max(logits, axis=0, keepdims=True)
    e = jnp.exp(logits - m)
    inv = pl.reciprocal(jnp.sum(e, axis=0, keepdims=True), approx=True)          # EUP slot
    if do_sum:
        if len(idxs) == 0:
            out = jnp.zeros((1, e.shape[-1]), jnp.float32)
        else:
            acc = e[idxs[0]:idxs[0] + 1, :]
            for i in idxs[1:]:
                acc = acc + e[i:i + 1, :]
            out = acc * inv
    else:
        rows = [e[i:i + 1, :] * inv for i in idxs]
        out = rows[0] if len(rows) == 1 else jnp.concatenate(rows, axis=0)
    o_ref[0] = out.astype(o_ref.dtype)


def _spatial_tile(S, max_tile=8192):
    """Largest multiple-of-128 divisor of S not exceeding max_tile (S itself if small)."""
    if S <= max_tile:
        return S
    for ts in range(max_tile, 127, -128):
        if S % ts == 0:
            return ts
    return S


def seg_softmax_select(patches, w1t, b1c, w2t, b2c, idxs, do_sum, H, W):
    """patches:[B,KP,H*W] -> [B, n_out, H, W]; one fused kernel, spatial axis tiled."""
    B, KPd, S = patches.shape
    n_out = 1 if do_sum else len(idxs)
    ts = _spatial_tile(S)
    kernel = functools.partial(_seg_head_kernel,
                               idxs=tuple(int(i) for i in idxs), do_sum=do_sum)
    out = pl.pallas_call(
        kernel,
        out_shape=jax.ShapeDtypeStruct((B, n_out, S), jnp.float32),
        grid=(B, S // ts),
        in_specs=[
            pl.BlockSpec((1, KPd, ts), lambda b, s: (b, 0, s)),
            pl.BlockSpec((HIDDEN, KPd), lambda b, s: (0, 0)),
            pl.BlockSpec((HIDDEN, 1), lambda b, s: (0, 0)),
            pl.BlockSpec((N_CLASSES, HIDDEN), lambda b, s: (0, 0)),
            pl.BlockSpec((N_CLASSES, 1), lambda b, s: (0, 0)),
        ],
        out_specs=pl.BlockSpec((1, n_out, ts), lambda b, s: (b, 0, s)),
        compiler_params=pltpu.CompilerParams(
            dimension_semantics=("parallel", "parallel")),
    )(patches, w1t, b1c, w2t, b2c)
    return out.reshape(B, n_out, H, W)


# ----------------------------------------------------------------------------
# Glue: resize matrices, host-side im2col
# ----------------------------------------------------------------------------
def build_area_matrix(out_size, in_size):
    """F.interpolate(mode='area') == adaptive average pooling, expressed as a matrix."""
    D = np.zeros((out_size, in_size), np.float32)
    for i in range(out_size):
        start = (i * in_size) // out_size
        end = -(-((i + 1) * in_size) // out_size)          # ceil div
        D[i, start:end] = 1.0 / (end - start)
    return jnp.asarray(D)


def build_bilinear_matrix(out_size, in_size):
    """F.interpolate(mode='bilinear', align_corners=False), as a matrix (half-pixel centers)."""
    U = np.zeros((out_size, in_size), np.float32)
    scale = in_size / out_size
    for i in range(out_size):
        src = (i + 0.5) * scale - 0.5
        src = max(src, 0.0)
        i0 = min(int(np.floor(src)), in_size - 1)
        i1 = min(i0 + 1, in_size - 1)
        w1 = src - i0
        U[i, i0] += 1.0 - w1
        U[i, i1] += w1
    return jnp.asarray(U)


def im2col_3x3_chan_rows(x, pad_value):
    """x:[B,C,H,W] -> patches [B, KP, H*W]; rows ordered (c, dy, dx), K padded 27->KP.

    Pad value 0.5 so the folded affine (2x-1) turns the border into 0, matching the
    original zero padding applied after img*2-1.
    """
    # TODO(synk): at real 512x512 scale this host-side im2col materializes 9x the image
    #             in HBM; the in-kernel alternative (9 shifted matmuls on a padded VMEM
    #             tile) needs lane-axis slices + minor-dim reshapes that are kept out of
    #             this version for lowering robustness.
    B, C, H, W = x.shape
    xp = jnp.pad(x, ((0, 0), (0, 0), (1, 1), (1, 1)), constant_values=pad_value)
    taps = [xp[:, :, dy:dy + H, dx:dx + W] for dy in range(3) for dx in range(3)]
    p = jnp.stack(taps, axis=2).reshape(B, C * 9, H * W)
    return jnp.pad(p, ((0, 0), (0, KP - C * 9), (0, 0)))


# ----------------------------------------------------------------------------
# FaceParser (Pallas version)
# ----------------------------------------------------------------------------
class FaceParser:
    def __init__(self, seed=0):
        self.all_masks = ['background', 'mouth', 'eyebrows', 'eyes', 'hair',
                          'nose', 'skin', 'ears', 'belowface']
        self.mask2idx = {k: self.all_masks.index(k) for k in self.all_masks}
        self.mask_idxs = {'mse': [self.mask2idx['skin']],
                          'blend': [self.mask2idx['skin']],
                          'shape': [], 'dynamic': []}
        # deterministic synthetic weights for the segmentation head
        key = jax.random.PRNGKey(seed)
        k1, k2, k3, k4 = jax.random.split(key, 4)
        w1 = jax.random.normal(k1, (3 * 9, HIDDEN), jnp.float32) * 0.1   # 3x3 conv, C_in=3
        b1 = jax.random.normal(k2, (1, HIDDEN), jnp.float32) * 0.01
        w2 = jax.random.normal(k3, (HIDDEN, N_CLASSES), jnp.float32) * 0.1   # 1x1 conv
        b2 = jax.random.normal(k4, (1, N_CLASSES), jnp.float32) * 0.01
        self.params = {'w1': w1, 'b1': b1, 'w2': w2, 'b2': b2}          # f32, for the reference

        # Fold img*2-1 into the first conv; pad K 27->32; transpose to the
        # channels-as-rows layout used by the fused kernel; bf16 MXU operands.
        self.w1t = jnp.pad((2.0 * w1).T, ((0, 0), (0, KP - 3 * 9))).astype(jnp.bfloat16)
        self.b1c = (b1 - jnp.sum(w1, axis=0, keepdims=True)).T.astype(jnp.float32)  # (HIDDEN,1)
        self.w2t = w2.T.astype(jnp.bfloat16)                                          # (NC,HIDDEN)
        self.b2c = b2.T.astype(jnp.float32)                                           # (NC,1)

        self.Uh = build_bilinear_matrix(UP, DOWN)
        self.Uw = build_bilinear_matrix(UP, DOWN)

    # --- attribute -> mask bookkeeping (identical to the PyTorch module) ---
    def set_idx_list(self, attributes):
        for attr in attributes:
            self.set_idx(attr)

    def set_idx(self, attribute):
        if attribute in ['wearing_lipstick', 'mouth_slightly_open', 'smiling', 'big_lips']:
            target_name = 'mouth'
        elif attribute in ['bushy_eyebrows', 'arched_eyebrows']:
            target_name = 'eyebrows'
        elif attribute in ['narrow_eyes']:
            target_name = 'eyes'
        elif attribute in ['pointy_nose', 'big_nose']:
            target_name = 'nose'
        elif attribute in ['black_hair', 'brown_hair', 'blond_hair', 'gray_hair',
                           'wavy_hair', 'straight_hair']:
            target_name = 'hair'
        else:
            raise ValueError('attribute not found')
        target_idx = self.mask2idx[target_name]
        self.mask_idxs['blend'] += [target_idx]
        self.mask_idxs['shape'] += [target_idx]
        self.mask_idxs['dynamic'] += [target_idx]
        if attribute in ('straight_hair', 'wavy_hair'):
            self.mask_idxs['mse'] += [self.mask2idx['ears']]
            self.mask_idxs['blend'] += [self.mask2idx['ears']]
            self.mask_idxs['shape'] += [self.mask2idx['ears']]

    def forward(self, img, mode):
        if img.shape[-1] != DOWN or img.shape[-2] != DOWN:
            Dh = build_area_matrix(DOWN, img.shape[-2])
            Dw = build_area_matrix(DOWN, img.shape[-1])
            img = resize_fused(img, Dh, Dw, out_dtype=jnp.bfloat16)   # area downsample
        else:
            img = img.astype(jnp.bfloat16)
        B, C, H, W = img.shape
        patches = im2col_3x3_chan_rows(img, 0.5)                      # (img*2-1 folded in w1)
        idxs = list(self.mask_idxs[mode])
        do_sum = mode != 'dynamic'
        if (not do_sum) and len(idxs) == 0:
            parsed = jnp.zeros((B, 0, H, W), jnp.float32)
        else:
            parsed = seg_softmax_select(patches, self.w1t, self.b1c, self.w2t, self.b2c,
                                        idxs, do_sum, H, W)
        if mode != 'shape':
            parsed = resize_fused(parsed, self.Uh, self.Uw, out_dtype=jnp.float32)
        return parsed


# ----------------------------------------------------------------------------
# Pure-JAX f32 reference (same synthetic weights / resize matrices), faithful to the
# original PyTorch math (no folding, no bf16).
# ----------------------------------------------------------------------------
def ref_forward(parser, img, mode):
    w1, b1 = parser.params['w1'], parser.params['b1']
    w2, b2 = parser.params['w2'], parser.params['b2']
    if img.shape[-1] != DOWN or img.shape[-2] != DOWN:
        Dh = build_area_matrix(DOWN, img.shape[-2])
        Dw = build_area_matrix(DOWN, img.shape[-1])
        img = jnp.einsum('oh,bchw,pw->bcop', Dh, img, Dw)
    x = img * 2.0 - 1.0
    B, C, H, W = x.shape
    xp = jnp.pad(x, ((0, 0), (0, 0), (1, 1), (1, 1)))
    taps = [xp[:, :, dy:dy + H, dx:dx + W] for dy in range(3) for dx in range(3)]
    p = jnp.stack(taps, axis=2).reshape(B, C * 9, H * W)              # rows (c, dy, dx)
    h = jax.nn.relu(jnp.einsum('ko,bks->bos', w1, p) + b1.T[None])
    logits = jnp.einsum('on,bos->bns', w2, h) + b2.T[None]
    probs = jax.nn.softmax(logits, axis=1)
    idxs = parser.mask_idxs[mode]
    do_sum = mode != 'dynamic'
    if len(idxs) == 0:
        sel = jnp.zeros((B, 0, H * W), jnp.float32)
    else:
        sel = probs[:, jnp.array(idxs, dtype=jnp.int32), :]
    if do_sum:
        sel = jnp.sum(sel, axis=1, keepdims=True)
    sel = sel.reshape(B, -1, H, W)
    if mode != 'shape':
        sel = jnp.einsum('oh,bchw,pw->bcop', parser.Uh, sel, parser.Uw)
    return sel


if __name__ == "__main__":
    key = jax.random.PRNGKey(0)
    img = jax.random.uniform(key, (2, 3, 32, 32), dtype=jnp.float32)   # NCHW, values in [0,1]

    parser = FaceParser(seed=0)
    parser.set_idx_list(['smiling'])     # adds 'mouth' to blend/shape/dynamic

    out_mse = parser.forward(img, 'mse')          # sum over [skin]  -> [2,1,32,32]
    out_dyn = parser.forward(img, 'dynamic')      # select [mouth]   -> [2,1,32,32]
    out_shp = parser.forward(img, 'shape')        # sum over [mouth], no upsample -> [2,1,16,16]
    jax.block_until_ready(out_mse)
    jax.block_until_ready(out_dyn)
    jax.block_until_ready(out_shp)

    # Tolerance accounts for bf16 MXU operands + approx softmax reciprocal in the Pallas
    # path vs. the pure-f32 reference; layout/index bugs would produce O(0.1) errors.
    for out, mode in ((out_mse, 'mse'), (out_dyn, 'dynamic'), (out_shp, 'shape')):
        ref = ref_forward(parser, img, mode)
        np.testing.assert_allclose(np.asarray(out), np.asarray(ref), rtol=5e-2, atol=1e-2)

    assert out_mse.shape == (2, 1, UP, UP)
    assert out_dyn.shape == (2, 1, UP, UP)
    assert out_shp.shape == (2, 1, DOWN, DOWN)

    print("KERNEL_OK")
</pallas_src>

<mosaic_0001>
module attributes {stable_mosaic.version = 11 : i64} {
  func.func @_resize_kernel(%arg0: i32, %arg1: memref<1x32x32xbf16, #tpu.memory_space<vmem>>, %arg2: memref<16x32xbf16, #tpu.memory_space<vmem>>, %arg3: memref<32x16xbf16, #tpu.memory_space<vmem>>, %arg4: memref<1x16x16xbf16, #tpu.memory_space<vmem>>) attributes {dimension_semantics = [#tpu.dimension_semantics<parallel>], iteration_bounds = array<i64: 6>, scalar_prefetch = 0 : i64, scratch_operands = 0 : i64, tpu.core_type = #tpu.core_type<tc>, window_params = [{transform_indices = @transform_0, window_bounds = array<i64: 1, 32, 32>}, {pipeline_mode = #tpu.pipeline_mode<synchronous>, transform_indices = @transform_1, window_bounds = array<i64: 16, 32>}, {pipeline_mode = #tpu.pipeline_mode<synchronous>, transform_indices = @transform_2, window_bounds = array<i64: 32, 16>}, {transform_indices = @transform_3, window_bounds = array<i64: 1, 16, 16>}]} {
    %c0 = arith.constant 0 : index
    %c0_0 = arith.constant 0 : index
    %0 = vector.load %arg2[%c0, %c0_0] : memref<16x32xbf16, #tpu.memory_space<vmem>>, vector<16x32xbf16>
    %c0_1 = arith.constant 0 : index
    %c0_2 = arith.constant 0 : index
    %c0_3 = arith.constant 0 : index
    %1 = vector.load %arg1[%c0_1, %c0_2, %c0_3] : memref<1x32x32xbf16, #tpu.memory_space<vmem>>, vector<1x32x32xbf16>
    %2 = vector.shape_cast %1 : vector<1x32x32xbf16> to vector<32x32xbf16>
    %cst = arith.constant dense<0.000000e+00> : vector<16x32xf32>
    %3 = tpu.matmul %0, %2, %cst {dimension_numbers = #tpu.dot_dimension_numbers<[1], [0], [0], [1], [0, 0, 1, 1], [], []>} : vector<16x32xbf16>, vector<32x32xbf16>, vector<16x32xf32> -> vector<16x32xf32>
    %4 = arith.truncf %3 : vector<16x32xf32> to vector<16x32xbf16>
    %c0_4 = arith.constant 0 : index
    %c0_5 = arith.constant 0 : index
    %5 = vector.load %arg3[%c0_4, %c0_5] : memref<32x16xbf16, #tpu.memory_space<vmem>>, vector<32x16xbf16>
    %cst_6 = arith.constant dense<0.000000e+00> : vector<16x16xf32>
    %6 = tpu.matmul %4, %5, %cst_6 {dimension_numbers = #tpu.dot_dimension_numbers<[1], [0], [0], [1], [0, 0, 1, 1], [], []>} : vector<16x32xbf16>, vector<32x16xbf16>, vector<16x16xf32> -> vector<16x16xf32>
    %7 = arith.truncf %6 : vector<16x16xf32> to vector<16x16xbf16>
    %c0_7 = arith.constant 0 : index
    %c0_8 = arith.constant 0 : index
    %c0_9 = arith.constant 0 : index
    %8 = vector.load %arg4[%c0_7, %c0_8, %c0_9] : memref<1x16x16xbf16, #tpu.memory_space<vmem>>, vector<1x16x16xbf16>
    %9 = vector.shape_cast %8 : vector<1x16x16xbf16> to vector<16x16xbf16>
    %10 = vector.shape_cast %7 : vector<16x16xbf16> to vector<1x16x16xbf16>
    tpu.vector_store %arg4[%c0_7, %c0_8, %c0_9], %10 {strides = array<i32>} : memref<1x16x16xbf16, #tpu.memory_space<vmem>>, vector<1x16x16xbf16>,
    return
  }
  func.func @transform_0(%arg0: i32) -> (i32, i32, i32) {
    %c0_i32 = arith.constant 0 : i32
    %c0_i32_0 = arith.constant 0 : i32
    %c0_i32_1 = arith.constant 0 : i32
    return %arg0, %c0_i32, %c0_i32_0 : i32, i32, i32
  }
  func.func @transform_1(%arg0: i32) -> (i32, i32) {
    %c0_i32 = arith.constant 0 : i32
    %c0_i32_0 = arith.constant 0 : i32
    %c0_i32_1 = arith.constant 0 : i32
    return %c0_i32, %c0_i32_0 : i32, i32
  }
  func.func @transform_2(%arg0: i32) -> (i32, i32) {
    %c0_i32 = arith.constant 0 : i32
    %c0_i32_0 = arith.constant 0 : i32
    %c0_i32_1 = arith.constant 0 : i32
    return %c0_i32, %c0_i32_0 : i32, i32
  }
  func.func @transform_3(%arg0: i32) -> (i32, i32, i32) {
    %c0_i32 = arith.constant 0 : i32
    %c0_i32_0 = arith.constant 0 : i32
    %c0_i32_1 = arith.constant 0 : i32
    return %arg0, %c0_i32, %c0_i32_0 : i32, i32, i32
  }
}

</mosaic_0001>

<bundles_post_ra>
// kernel: tpu_custom_call.1
= control target key start
LH: loop header
LB: loop body
LE: loop exit
PB: predicated region body
PF: predicated region fallthrough
CT: control target
= control target key end

     0   :  { %8 = vsyncpa [#allocation3], 0  ;;  %s819_s0 = inlined_call_operand.hbm [shape: bf16[6,32,32], index: 0, kind: input, shape index: {}]   ;;  %s820_s1 = inlined_call_operand.vmem [shape: bf16[16,32], index: 1, kind: input, shape index: {}]   ;;  %s821_s2 = inlined_call_operand.vmem [shape: bf16[32,16], index: 2, kind: input, shape index: {}]   ;;  %s822_s3 = inlined_call_operand.hbm [shape: bf16[6,16,16], index: 3, kind: output, shape index: {}]  }
   0x1   :  { %10 = vsyncpa [#allocation3 + $0x1], 0 }
   0x2   :  { %11 = vsyncpa [#allocation4], 0 }
   0x3   :  { %13 = vsyncpa [#allocation4 + $0x1], 0  ;;  %s649_s12 = smov 0   ;;  %s651_s13 = smov 0  }
   0x4   :  { %s653_s14 = smov 0   ;;  %s655_s15 = smov 0  }
   0x5 LB: > { %s670_s16 = sadd.s32 4294967295, %s619_s15   ;;  %s417_s17 = sadd.s32 4294967294, %s619_s15   ;;  %s619_s15 = sphi %s655_s15, %s834_s15   ;;  %s615_s14 = sphi %s653_s14, %s833_s14   ;;  %s611_s13 = sphi %s651_s13, %s832_s13   ;;  %s607_s12 = sphi %s649_s12, %s831_s12  }
   0x6   : > { %s674_s18 = sadd.s32 1, %s619_s15   ;;  %s26_s19 = sadd.s32 1, %s615_s14 }
   0x7   : > { %s23_s20 = ssub.s32 %s619_s15, %s674_s18  ;;  %p33_p0 = scmp.ne.s32.totalorder %s615_s14, %s611_s13 }
   0x8   : > { %p24_p1 = scmp.eq.s32.totalorder %s23_s20, 0  ;;  %p34_p2 = scmp.eq.s32.totalorder %s619_s15, 0 }
   0x9   : > { %p39_p3 = scmp.ne.s32.totalorder %s611_s13, %s607_s12  ;;  %p40_p4 = scmp.eq.s32.totalorder %s670_s16, 0 }
   0xa   : > { %s686_s21 = scalar_select %p24_p1, %s615_s14, %s26_s19  }
   0xb   : > { %p688_p5 = por %p34_p2, %p33_p0  ;;  %p692_p6 = por %p40_p4, %p39_p3 }
   0xc   : > { %p105_p7 = scmp.eq.s32.totalorder %s670_s16, 5  ;;  %p111_p8 = scmp.eq.s32.totalorder %s417_s17, 5 }
   0xd   : > { %p478_p9 = scmp.lt.s32.totalorder %s619_s15, 6  ;;  %s137_s26 = sand.u32 1, %s615_s14  }
   0xe   : > { %p698_p10 = por %p105_p7, %p33_p0  ;;  %p702_p11 = por %p111_p8, %p39_p3 }
   0xf   : > { %s440_s27 = sshll.u32 %s619_s15, 8  ;;  %s420_s28 = sshll.u32 %s137_s26, 4 }
  0x10   : > { %s826_s24 = scalar_select %p698_p10, 1, 0 }
  0x11   : > { %s827_s25 = scalar_select %p702_p11, 1, 0 }
  0x12   : > { %s711_s4 = scalar_lea.hbm %s819_s0, %s440_s27  ;;  %s141_s5 = scalar_lea.vmem [#allocation2], %s420_s28 }
  0x13   : > { %s148_s6 = sshll.u32 %s141_s5, 4  ;;  %p715_p12 = pnand %p478_p9, %p688_p5  ;;  %s719_s6 = int_to_ptr.vmem [resolvable:$true] %s148_s6 }
  0x14   : > { %s721_s8 = scalar_lea.sflag [#allocation3], %s137_s26  ;;  %s523_s9 = scalar_lea.hbm %s711_s4, 256 }
  0x15   : > { %p524_p13 = scmp.ne.s32.totalorder %s711_s4, %s523_s9  ;;  %p525_p0 = pneg %p715_p12 }
  0x16   : > { %s528_s17 = scalar_lea.hbm %s819_s0, 1536  ;;  %p529_p3 = scmp.lt.u32.totalorder %s711_s4, %s819_s0 }
  0x17   : > { %p526_p1 = pnand %p525_p0, %p524_p13  ;;  %p530_p4 = scmp.lt.u32.totalorder %s528_s17, %s523_s9 }
  0x18   : > { %p532_p7 = scmp.lt.u32.totalorder %s523_s9, %s711_s4 }
  0x19   : > { %p527_p2 = pneg %p526_p1  ;;  %p531_p5 = por %p530_p4, %p529_p3 }
  0x1b   : > { %p533_p8 = por %p532_p7, %p531_p5 }
  0x1d   : > { %p534_p9 = pnand %p533_p8, %p527_p2 }
  0x1f   : > { %537 = shalt.err (!%p534_p9)
}
  0x20   : > { %s538_s22 = scalar_lea.vmem %s719_s6, 256  ;;  %s621_s26 = smov [#allocation2]  }
  0x21   : > { %p539_p13 = scmp.ne.s32.totalorder %s719_s6, %s538_s22  ;;  %s543_s27 = sshll.u32 %s621_s26, 4  ;;  %s544_s27 = int_to_ptr.vmem [resolvable:$false] %s543_s27 }
  0x22   : > { %s545_s28 = scalar_lea.vmem %s544_s27, 512  ;;  %p546_p10 = scmp.lt.s32.totalorder %s719_s6, %s544_s27 }
  0x23   : > { %p541_p1 = pnand %p539_p13, %p525_p0  ;;  %p547_p3 = scmp.lt.s32.totalorder %s545_s28, %s538_s22 }
  0x25   : > { %p542_p11 = pneg %p541_p1  ;;  %p548_p4 = por %p547_p3, %p546_p10 }
  0x27   : > { %p549_p5 = pnand %p548_p4, %p542_p11 }
  0x29   : > { %552 = shalt.err (!%p549_p5)
}
  0x2a   : > { %s622_s29 = smov 64   ;;  %s623_s30 = smov 4  }
  0x2b   : > { %473 = dma.hbm_to_vmem [thread:$0]  (!%p715_p12), %s711_s4, 256, %s719_s6, %s721_s8, %s622_s29, %s622_s29, %s623_s30  }
  0x2c   : > { %p423_p0 = scmp.ge.s32.totalorder %s619_s15, 1  ;;  %p156_p2 = scmp.lt.s32.totalorder %s619_s15, 7 }
  0x2e   : > { %p157_p7 = pnand %p423_p0, %p156_p2 }
  0x2f   : > { %s752_s5 = sand.u32 (!%p157_p7), 1, %s611_s13  }
  0x30   : > { %160 = sbr.rel (%p157_p7) target bundleno = 513 (0x201), region = 32  ;;  %s424_s9 = sshll.u32 (!%p157_p7), %s752_s5, 4 }
  0x31   : > { %s163_s10 = scalar_lea.sflag (!%p157_p7), [#allocation3], %s752_s5  ;;  %s166_s11 = scalar_lea.vmem (!%p157_p7), [#allocation2], %s424_s9 }
  0x37   : > { %598 = dma.done.wait (%p692_p6), %s163_s10, 256  }
  0x38   : > { %600 = vsyncadd (%p692_p6), %s163_s10, 4294967040  ;;  %v624_v0 = vmov 0.0   ;;  %vm625_vm0 = vmmov 0   ;;  %v518_v1 = vld [vmem:[%s166_s11] sm:$0xff]   ;;  %v519_v2 = vld [vmem:[%s166_s11 + $0x8] sm:$0xff]   ;;  %vm213_vm1 = vcmask 261120  }
  0x39   : > { %450 = vmatprep.subr.bf16.mxu0 %v624_v0  ;;  %454 = vmatprep.mubr.msk.bf16.mxu0 %vm625_vm0, %v624_v0  ;;  %v521_v3 = vld [vmem:[%s821_s2] sm:$0xff]   ;;  %v522_v5 = vld [vmem:[%s821_s2 + $0x8] sm:$0xff]   ;;  %s425_s19 = sshll.u32 %s752_s5, 3  ;;  %s443_s26 = sshll.u32 %s670_s16, 7  ;;  %vm327_vm2 = vcmask 125952  }
  0x3a   : > { %458 = vmatprep.subr.bf16.mxu1 %v624_v0  ;;  %462 = vmatprep.mubr.msk.bf16.mxu1 %vm625_vm0, %v624_v0  ;;  %v520_v4 = vld [vmem:[%s820_s1] sm:$0xff]   ;;  %s188_s20 = scalar_lea.vmem [#allocation5], %s425_s19  ;;  %s776_s29 = scalar_lea.hbm %s822_s3, %s443_s26 }
  0x3b   : > { %451 = vmatpush3.bf16.msra.mxu0 %v518_v1  ;;  %459 = vmatpush3.bf16.msra.mxu1 %v521_v3  ;;  %s344_s22 = sshll.u32 %s188_s20, 4  ;;  %s331_s16 = scalar_lea.sflag [#allocation4], %s752_s5  ;;  %s771_s22 = int_to_ptr.vmem [resolvable:$true] %s344_s22 }
  0x3c   : > { %452 = vmatprep.subr.bf16.mxu0 %v624_v0  ;;  %460 = vmatprep.subr.bf16.mxu1 %v624_v0  ;;  %s553_s30 = scalar_lea.vmem %s771_s22, 128  ;;  %p829_p10 = scmp.ne.s32.totalorder %s826_s24, 0 }
  0x3d   : > { %p554_p6 = scmp.ne.s32.totalorder %s771_s22, %s553_s30  ;;  %s626_s9 = smov [#allocation5]  }
  0x3e   : > { %s557_s10 = sshll.u32 %s626_s9, 4  ;;  %s558_s10 = int_to_ptr.vmem [resolvable:$false] %s557_s10 }
  0x3f   : > { %453 = vmatpush3.bf16.msra.mxu0 %v519_v2  ;;  %461 = vmatpush3.bf16.msra.mxu1 %v522_v5  ;;  %p555_p11 = pnand %p554_p6, %p829_p10  ;;  %s559_s11 = scalar_lea.vmem %s558_s10, 256 }
  0x40   : > { %p560_p8 = scmp.lt.s32.totalorder %s771_s22, %s558_s10  ;;  %p561_p9 = scmp.lt.s32.totalorder %s559_s11, %s553_s30 }
  0x41   : > { %p556_p12 = pneg %p555_p11 }
  0x42   : > { %455 = vmatmul.mubr.msk.bf16.vlgmr.msra.gmra.mrb[0].mxu0 %vm213_vm1, %v520_v4  ;;  %p562_p13 = por %p561_p9, %p560_p8 }
  0x44   : > { %p563_p1 = pnand %p562_p13, %p556_p12 }
 0x115   : > { %v251_v6 = vpop.f32.mrb[0].mxu0 }
 0x116   : > { %v456_v7 = vpop.f32.mrb[1].mxu0 }
 0x117   : > { %v254_v8 = vpop.f32.mrb[2].mxu0 }
 0x118   : > { %v258_v9 = vpack.c.bf16 %v254_v8, %v251_v6  ;;  %v457_v10 = vpop.f32.mrb[3].mxu0 }
 0x11a   : > { %463 = vmatmul.mubr.msk.bf16.vlgmr.msra.gmra.mrb[0].mxu1 %vm213_vm1, %v258_v9 }
 0x1ed   : > { %v312_v11 = vpop.f32.mrb[0].mxu1 }
 0x1ee   : > { %v441_v12 = vpack.c.bf16 %v312_v11, %v312_v11  ;;  %v464_v13 = vpop.f32.mrb[1].mxu1 }
 0x1ef   : > { %v315_v14 = vpop.f32.mrb[2].mxu1 }
 0x1f0   : > { %328 = vst.msk [vmem:[%s188_s20] sm:$0xf] %vm327_vm2, %v441_v12  ;;  %v442_v15 = vpack.c.bf16 %v315_v14, %v315_v14  ;;  %v465_v16 = vpop.f32.mrb[3].mxu1 }
 0x1f2   : > { %329 = vst.msk [vmem:[%s188_s20 + $0x4] sm:$0xf] %vm327_vm2, %v442_v15 }
 0x1f3   : > { %566 = shalt.err (!%p563_p1)
}
 0x1f4   : > { %s567_s4 = scalar_lea.hbm %s776_s29, 128  ;;  %s571_s8 = scalar_lea.hbm %s822_s3, 768 }
 0x1f5   : > { %p568_p3 = scmp.ne.s32.totalorder %s776_s29, %s567_s4  ;;  %p572_p0 = scmp.lt.u32.totalorder %s776_s29, %s822_s3 }
 0x1f6   : > { %p573_p2 = scmp.lt.u32.totalorder %s571_s8, %s567_s4  ;;  %p575_p6 = scmp.lt.u32.totalorder %s567_s4, %s776_s29 }
 0x1f7   : > { %p569_p4 = pnand %p568_p3, %p829_p10 }
 0x1f8   : > { %p574_p7 = por %p573_p2, %p572_p0 }
 0x1f9   : > { %p570_p5 = pneg %p569_p4 }
 0x1fa   : > { %p576_p11 = por %p575_p6, %p574_p7 }
 0x1fc   : > { %p577_p12 = pnand %p576_p11, %p570_p5 }
 0x1fe   : > { %580 = shalt.err (!%p577_p12)
}
 0x1ff   : > { %s627_s19 = smov 64   ;;  %s628_s20 = smov 4  }
 0x200   : > { %468 = dma.vmem_to_hbm [thread:$0]  (%p829_p10), %s771_s22, 128, %s776_s29, %s331_s16, %s627_s19, %s627_s19, %s628_s20  }
 0x201 PF: > { %p479_p8 = scmp.ge.s32.totalorder %s619_s15, 2  ;;  %s359_s26 = sand.u32 1, %s607_s12  }
 0x202   : > { %p830_p9 = scmp.ne.s32.totalorder %s827_s25, 0  ;;  %s360_s27 = scalar_lea.sflag [#allocation4], %s359_s26 }
 0x204   : > { %p475_p13 = pnand %p479_p8, %p830_p9 }
 0x206   : > { %602 = dma.done.wait (!%p475_p13), %s360_s27, 128  }
 0x207   : > { %604 = vsyncadd (!%p475_p13), %s360_s27, 4294967168  ;;  %p16_p1 = scmp.ge.s32.totalorder %s674_s18, 8   ;;  %s831_s12 = smov %s611_s13 }
 0x208   : > { %s832_s13 = smov %s615_s14  ;;  %s833_s14 = smov %s686_s21 }
 0x209   : > { %s834_s15 = smov %s674_s18  ;;  %18 = sbr.rel (!%p16_p1) target bundleno = 5 (0x5), region = 77 }
 0x210   :  { %365 = vsyncpa [#allocation3], 1 }
 0x211   :  { %367 = vsyncpa [#allocation3 + $0x1], 1 }
 0x212   :  { %368 = vsyncpa [#allocation4], 1 }
 0x213   :  { %370 = vsyncpa [#allocation4 + $0x1], 1 }

</bundles_post_ra>
